<compile_context>
chip_gen: v5e
topology: v5e:2x2
jax: 0.10.0
libtpu: 0.0.40
codegen_flags: <defaults>
</compile_context>

<pallas_src>
import numpy as np
import jax
import jax.numpy as jnp
from jax.experimental import pallas as pl
from jax.experimental.pallas import tpu as pltpu

# ----------------------------- configuration --------------------------------
SCALING_FACTOR = 0.18215        # vae.config.scaling_factor
PATCH = 8                       # synthetic VAE spatial downscale (SD VAE is 8x)
LATENT_C = 4                    # unet.config.in_channels
IMG_C = 3
HIDDEN = 32                     # synthetic text-encoder width
SEQ = 8                         # synthetic tokenizer max_length
VOCAB = 64
NUM_TRAIN_TIMESTEPS = 1000
LATENT_TILED_SIZE = 4           # args.latent_tiled_size
LATENT_TILED_OVERLAP = 2        # args.latent_tiled_overlap

K_ENC = IMG_C * PATCH * PATCH   # 192  (encode contraction dim)
N_DEC = IMG_C * PATCH * PATCH   # 192  (decode feature dim)
N_DEC_PAD = 256                 # padded to 2*128 lanes -> unmasked stores

_VMEM_LIMIT = 32 * 1024 * 1024  # safe scoped-VMEM budget on v5e/v6e/v7x
_ENC_TILE = 2048                # pixel columns per encode block (multiple of 128)
_DEC_TILE = 1024                # pixel rows per decode block (multiple of 8)


# --------------------------- VAE encode kernel --------------------------------
def _encode_kernel(xT_ref, wT_ref, b_ref, o_ref):
    # (C, K) bf16 @ (K, tm) bf16 -> (C, tm) f32 on the MXU.  Output is
    # lane-dense (pixels on lanes).  * vae scaling_factor fused.
    y = jnp.dot(wT_ref[...], xT_ref[...], preferred_element_type=jnp.float32)
    o_ref[...] = (y + b_ref[...]) * SCALING_FACTOR


def vae_encode(xT_bf16, enc_wT_bf16, enc_b):
    K, M = xT_bf16.shape
    C = enc_wT_bf16.shape[0]
    if M <= _ENC_TILE:
        tm, Mp = M, M                      # full lane extent -> no padding
    else:
        tm = _ENC_TILE                     # multiple of 128
        Mp = pl.cdiv(M, tm) * tm
    x = xT_bf16 if Mp == M else jnp.pad(xT_bf16, ((0, 0), (0, Mp - M)))
    out = pl.pallas_call(
        _encode_kernel,
        out_shape=jax.ShapeDtypeStruct((C, Mp), jnp.float32),
        grid=(Mp // tm,),
        in_specs=[pl.BlockSpec((K, tm), lambda i: (0, i)),
                  pl.BlockSpec((C, K), lambda i: (0, 0)),     # resident weights
                  pl.BlockSpec((C, 1), lambda i: (0, 0))],    # resident bias col
        out_specs=pl.BlockSpec((C, tm), lambda i: (0, i)),
        compiler_params=pltpu.CompilerParams(
            dimension_semantics=("parallel",),
            vmem_limit_bytes=_VMEM_LIMIT),
    )(x, enc_wT_bf16, enc_b.reshape(C, 1).astype(jnp.float32))
    return out[:, :M]


# --------------------------- VAE decode kernel --------------------------------
def _decode_kernel(x_ref, w_ref, b_ref, o_ref):
    # K=4 contraction as VPU broadcast-FMAs (MXU would idle at K=4).
    # N is padded to 256 lanes so every output store is an unmasked vst.
    # clamp(-1, 1) fused.
    x = x_ref[...]                               # (tm, 4)
    w = w_ref[...]                               # (4, N_DEC_PAD)
    y = x[:, 0:1] * w[0:1, :]
    for c in range(1, w.shape[0]):
        y = y + x[:, c:c + 1] * w[c:c + 1, :]
    o_ref[...] = jnp.clip(y + b_ref[...], -1.0, 1.0)


def vae_decode(x_flat, dec_w_pad, dec_b_pad):
    M, C = x_flat.shape
    N = dec_w_pad.shape[1]
    if M <= _DEC_TILE:
        tm, Mp = M, M
    else:
        tm = _DEC_TILE                     # multiple of 8
        Mp = pl.cdiv(M, tm) * tm
    x = x_flat if Mp == M else jnp.pad(x_flat, ((0, Mp - M), (0, 0)))
    out = pl.pallas_call(
        _decode_kernel,
        out_shape=jax.ShapeDtypeStruct((Mp, N), jnp.float32),
        grid=(Mp // tm,),
        in_specs=[pl.BlockSpec((tm, C), lambda i: (i, 0)),
                  pl.BlockSpec((C, N), lambda i: (0, 0)),
                  pl.BlockSpec((1, N), lambda i: (0, 0))],
        out_specs=pl.BlockSpec((tm, N), lambda i: (i, 0)),
        compiler_params=pltpu.CompilerParams(
            dimension_semantics=("parallel",),
            vmem_limit_bytes=_VMEM_LIMIT),
    )(x, dec_w_pad, dec_b_pad.reshape(1, N))
    return out[:M]


# ---------------- fused tiled-UNet + gaussian blend + x0 kernel ----------------
def _tiled_unet_x0_kernel(lat_ref, wmap_ref, w_ref, cond_ref, soma_ref, isa_ref,
                          out_ref):
    # lat_ref / out_ref: (C, HW) lane-dense slabs for the current batch element.
    # wmap_ref: (1, HW) per-tile gaussian weights with 1/contributors folded in
    # (zero outside the tile), so accumulation is plain lane-dense FMAs — no
    # dynamic sublane slicing, no divide in the epilogue.
    b = pl.program_id(0)
    t = pl.program_id(1)
    C = lat_ref.shape[0]

    @pl.when(t == 0)
    def _init():
        out_ref[...] = jnp.zeros_like(out_ref)

    wm = wmap_ref[0]                                   # (HW,)
    lat = [lat_ref[ci] for ci in range(C)]             # (HW,) per channel

    # synthetic 1x1-conv UNet: C*C broadcast-FMAs over full (HW,) slabs with
    # SMEM scalar weights; cond = timestep emb + pooled caption + unet bias.
    for co in range(C):
        p = lat[0] * w_ref[0, co] + cond_ref[b, co]
        for ci in range(1, C):
            p = p + lat[ci] * w_ref[ci, co]
        out_ref[co] += p * wm                          # blend accumulation

    # finalize on the last tile: get_x0_from_noise + /scaling_factor, in place.
    @pl.when(t == pl.num_programs(1) - 1)
    def _finalize():
        soma = soma_ref[b]        # sqrt(1 - alphas_cumprod[t_b])
        isa = isa_ref[b]          # 1 / (sqrt(alphas_cumprod[t_b]) * scaling)
        for c in range(C):
            out_ref[c] = (lat_ref[c] - soma * out_ref[c]) * isa


def tiled_unet_x0(latent, wmaps, unet_w, cond_eff, soma, isa):
    B, C, HW = latent.shape
    T = wmaps.shape[0]
    smem = pl.BlockSpec(memory_space=pltpu.MemorySpace.SMEM)
    return pl.pallas_call(
        _tiled_unet_x0_kernel,
        out_shape=jax.ShapeDtypeStruct((B, C, HW), jnp.float32),
        grid=(B, T),
        in_specs=[
            pl.BlockSpec((None, C, HW), lambda b, t: (b, 0, 0)),  # latent: resident per b
            pl.BlockSpec((None, 1, HW), lambda b, t: (t, 0, 0)),  # per-tile weight map
            smem,                                                 # unet 1x1 weights (C,C)
            smem,                                                 # cond_eff (B,C)
            smem,                                                 # soma (B,)
            smem,                                                 # isa (B,)
        ],
        out_specs=pl.BlockSpec((None, C, HW), lambda b, t: (b, 0, 0)),
        compiler_params=pltpu.CompilerParams(
            # B axis is parallel (2nd TC on v7x); tile axis must stay sequential
            # because overlapping tiles accumulate into the same output block.
            dimension_semantics=("parallel", "arbitrary"),
            vmem_limit_bytes=_VMEM_LIMIT),
    )(latent, wmaps, unet_w, cond_eff, soma, isa)


# --------------------------- host-side constants ------------------------------
def _gaussian_weights_2d(tile_width, tile_height):
    """Exactly HeroSR._gaussian_weights (one channel slice; all channels equal)."""
    from numpy import pi, exp, sqrt
    latent_width = tile_width
    latent_height = tile_height
    var = 0.01
    midpoint = (latent_width - 1) / 2
    x_probs = [exp(-(x - midpoint) * (x - midpoint) / (latent_width * latent_width)
                   / (2 * var)) / sqrt(2 * pi * var) for x in range(latent_width)]
    midpoint = latent_height / 2
    y_probs = [exp(-(y - midpoint) * (y - midpoint) / (latent_height * latent_height)
                   / (2 * var)) / sqrt(2 * pi * var) for y in range(latent_height)]
    return np.outer(y_probs, x_probs)


def _tile_schedule(h, w, tile_size, tile_overlap):
    """Replicates the reference row/col offset logic; returns [(sy, sx), ...]."""
    grid_rows = 0
    cur_x = 0
    while cur_x < w:
        cur_x = max(grid_rows * tile_size - tile_overlap * grid_rows, 0) + tile_size
        grid_rows += 1
    grid_cols = 0
    cur_y = 0
    while cur_y < h:
        cur_y = max(grid_cols * tile_size - tile_overlap * grid_cols, 0) + tile_size
        grid_cols += 1
    offsets = []
    ofs_x = ofs_y = 0          # explicit init (reference relies on loop carry-over)
    for row in range(grid_rows):
        for col in range(grid_cols):
            if col < grid_cols - 1 or row < grid_rows - 1:
                ofs_x = max(row * tile_size - tile_overlap * row, 0)
                ofs_y = max(col * tile_size - tile_overlap * col, 0)
            if row == grid_rows - 1:
                ofs_x = w - tile_size
            if col == grid_cols - 1:
                ofs_y = h - tile_size
            offsets.append((ofs_y, ofs_x))
    return offsets


def _blend_weight_maps(h, w, tile_size, tile_overlap):
    """Full (T, 1, h*w) per-tile gaussian maps with 1/contributors folded in."""
    if h * w <= tile_size * tile_size:
        offsets = [(0, 0)]
        gw = np.ones((h, w), np.float64)       # non-tiled path: one "tile", weight 1
        th_, tw_ = h, w
    else:
        tile_size = min(tile_size, min(h, w))
        gw = _gaussian_weights_2d(tile_size, tile_size)
        offsets = _tile_schedule(h, w, tile_size, tile_overlap)
        th_, tw_ = tile_size, tile_size
    T = len(offsets)
    wmaps = np.zeros((T, h, w), np.float64)
    contrib = np.zeros((h, w), np.float64)
    for t, (sy, sx) in enumerate(offsets):
        wmaps[t, sy:sy + th_, sx:sx + tw_] = gw
        contrib[sy:sy + th_, sx:sx + tw_] += gw
    assert contrib.min() > 0, "tile schedule left a latent pixel uncovered"
    wmaps /= contrib[None]                      # fold 1/contributors (tile-independent)
    return jnp.asarray(wmaps.reshape(T, 1, h * w), jnp.float32)


def init_params(key):
    ks = jax.random.split(key, 9)
    p = {}
    p["tok_emb"] = jax.random.normal(ks[0], (VOCAB, HIDDEN), jnp.float32) * 0.1
    p["pos_emb"] = jax.random.normal(ks[1], (SEQ, HIDDEN), jnp.float32) * 0.1
    p["te_w"] = jax.random.normal(ks[2], (HIDDEN, HIDDEN), jnp.float32) * 0.1
    p["te_b"] = jnp.zeros((HIDDEN,), jnp.float32)
    p["cap_w"] = jax.random.normal(ks[3], (HIDDEN, LATENT_C), jnp.float32) * 0.1
    p["cap_b"] = jnp.zeros((LATENT_C,), jnp.float32)
    p["enc_w"] = jax.random.normal(ks[4], (K_ENC, LATENT_C), jnp.float32) * 0.05
    p["enc_b"] = jnp.zeros((LATENT_C,), jnp.float32)
    p["dec_w"] = jax.random.normal(ks[5], (LATENT_C, N_DEC), jnp.float32) * 0.05
    p["dec_b"] = jnp.zeros((N_DEC,), jnp.float32)
    p["unet_w"] = jax.random.normal(ks[6], (LATENT_C, LATENT_C), jnp.float32) * 0.1
    p["unet_b"] = jnp.zeros((LATENT_C,), jnp.float32)
    p["time_w"] = jax.random.normal(ks[7], (LATENT_C,), jnp.float32) * 0.1
    betas = np.linspace(1e-4, 0.02, NUM_TRAIN_TIMESTEPS, dtype=np.float64)
    p["alphas_cumprod"] = jnp.asarray(np.cumprod(1.0 - betas), jnp.float32)
    return p


def tokenize(prompt):
    ids = [(ord(c) % (VOCAB - 1)) + 1 for c in prompt][:SEQ]
    ids = ids + [0] * (SEQ - len(ids))
    return jnp.asarray(ids, jnp.int32)[None, :]


# -------------------------------- forward ------------------------------------
def hero_sr_forward(params, input_image, prompt="super resolution"):
    B, C, H, W = input_image.shape
    assert C == IMG_C and H % PATCH == 0 and W % PATCH == 0

    # --- tokenizer + CLIP text-encoder stand-in (plain XLA: few-KB compute) ---
    tokens = tokenize(prompt)
    emb = params["tok_emb"][tokens[0]] + params["pos_emb"]               # (SEQ, HIDDEN)
    enc = emb @ params["te_w"] + params["te_b"]
    cap_bias = jnp.mean(enc @ params["cap_w"], axis=0) + params["cap_b"]  # (LATENT_C,)

    # --- TimeAdaptive stand-in: per-image mean -> timestep (plain XLA) ---
    m = jnp.mean(input_image.reshape(B, -1), axis=1)
    timesteps = jnp.clip(jnp.round((m + 1.0) * 0.5 * (NUM_TRAIN_TIMESTEPS - 1)),
                         0, NUM_TRAIN_TIMESTEPS - 1).astype(jnp.int32)

    # --- VAE encode: patchify to X^T (K, B*h*w); the bf16 cast is fused into the
    #     same XLA transpose copy (no extra HBM round trip), then one transposed
    #     MXU matmul kernel whose (4, B*h*w) output is lane-dense channel-major
    #     latent (* scaling_factor fused). ---
    # TODO(synk): patchify / un-patchify are still host-side XLA transposes; they
    # could be fused into the encode/decode kernels as PATCH-row-strip BlockSpecs.
    h, w = H // PATCH, W // PATCH
    HW, M = h * w, B * h * w
    xT = jnp.transpose(input_image.reshape(B, IMG_C, h, PATCH, w, PATCH),
                       (1, 3, 5, 0, 2, 4)).reshape(K_ENC, M).astype(jnp.bfloat16)
    lat_cm = vae_encode(xT, params["enc_w"].T.astype(jnp.bfloat16), params["enc_b"])
    latent = jnp.transpose(lat_cm.reshape(LATENT_C, B, HW), (1, 0, 2))   # (B, C, h*w)
    # TODO(synk): reference samples the VAE posterior (latent_dist.sample()); mean used.

    # --- conditioning: timestep emb + pooled caption + unet bias, folded once ---
    t_emb = (timesteps.astype(jnp.float32) / NUM_TRAIN_TIMESTEPS)[:, None] \
        * params["time_w"][None, :]
    cond_eff = t_emb + cap_bias[None, :] + params["unet_b"][None, :]     # (B, LATENT_C)

    # --- host-side tile schedule; 1/contributors folded into the weight maps ---
    wmaps = _blend_weight_maps(h, w, LATENT_TILED_SIZE, LATENT_TILED_OVERLAP)

    # --- per-batch DDPM scalars for get_x0_from_noise (fused into the kernel) ---
    acp_t = jnp.take(params["alphas_cumprod"], timesteps)
    soma = jnp.sqrt(1.0 - acp_t)                                         # (B,)
    isa = 1.0 / (jnp.sqrt(acp_t) * SCALING_FACTOR)                       # (B,)
    # TODO(synk): reference runs get_x0_from_noise in float64; TPU Pallas has no f64.

    # --- ONE gridded kernel: per-tile UNet + gaussian blend accumulation into the
    #     resident output block, x0 + /scaling_factor finalize in place ---
    x0_scaled = tiled_unet_x0(latent, wmaps, params["unet_w"], cond_eff, soma, isa)

    # --- VAE decode: padded (256-lane) output, clamp(-1,1) fused ---
    dec_w_pad = jnp.pad(params["dec_w"], ((0, 0), (0, N_DEC_PAD - N_DEC)))
    dec_b_pad = jnp.pad(params["dec_b"], (0, N_DEC_PAD - N_DEC))
    x_flat = jnp.transpose(x0_scaled, (0, 2, 1)).reshape(M, LATENT_C)
    dec = vae_decode(x_flat, dec_w_pad, dec_b_pad)[:, :N_DEC]
    output_image = jnp.transpose(
        dec.reshape(B, h, w, IMG_C, PATCH, PATCH), (0, 3, 1, 4, 2, 5)
    ).reshape(B, IMG_C, H, W)
    return output_image


# ----------------------------------- main ------------------------------------
if __name__ == "__main__":
    key = jax.random.PRNGKey(0)
    pkey, xkey = jax.random.split(key)
    params = init_params(pkey)
    # small NCHW image in [-1, 1]; latent 8x8 -> tiled path with 9 overlapping tiles
    input_image = jax.random.uniform(xkey, (2, IMG_C, 64, 64),
                                     dtype=jnp.float32, minval=-1.0, maxval=1.0)
    out = hero_sr_forward(params, input_image, prompt="a photo of a cat")
    out = jax.block_until_ready(out)
    assert out.shape == (2, IMG_C, 64, 64)
    assert bool(jnp.all(jnp.isfinite(out)))
    print("KERNEL_OK")
</pallas_src>

<mosaic_0001>
module attributes {stable_mosaic.version = 11 : i64} {
  func.func @_encode_kernel(%arg0: i32, %arg1: memref<192x128xbf16, #tpu.memory_space<vmem>>, %arg2: memref<4x192xbf16, #tpu.memory_space<vmem>>, %arg3: memref<4x1xf32, #tpu.memory_space<vmem>>, %arg4: memref<4x128xf32, #tpu.memory_space<vmem>>) attributes {dimension_semantics = [#tpu.dimension_semantics<parallel>], iteration_bounds = array<i64: 1>, scalar_prefetch = 0 : i64, scratch_operands = 0 : i64, tpu.core_type = #tpu.core_type<tc>, window_params = [{transform_indices = @transform_0, window_bounds = array<i64: 192, 128>}, {pipeline_mode = #tpu.pipeline_mode<synchronous>, transform_indices = @transform_1, window_bounds = array<i64: 4, 192>}, {pipeline_mode = #tpu.pipeline_mode<synchronous>, transform_indices = @transform_2, window_bounds = array<i64: 4, 1>}, {transform_indices = @transform_3, window_bounds = array<i64: 4, 128>}]} {
    %c0 = arith.constant 0 : index
    %c0_0 = arith.constant 0 : index
    %0 = vector.load %arg2[%c0, %c0_0] : memref<4x192xbf16, #tpu.memory_space<vmem>>, vector<4x192xbf16>
    %c0_1 = arith.constant 0 : index
    %c0_2 = arith.constant 0 : index
    %1 = vector.load %arg1[%c0_1, %c0_2] : memref<192x128xbf16, #tpu.memory_space<vmem>>, vector<192x128xbf16>
    %cst = arith.constant dense<0.000000e+00> : vector<4x128xf32>
    %2 = tpu.matmul %0, %1, %cst {dimension_numbers = #tpu.dot_dimension_numbers<[1], [0], [0], [1], [0, 0, 1, 1], [], []>} : vector<4x192xbf16>, vector<192x128xbf16>, vector<4x128xf32> -> vector<4x128xf32>
    %c0_3 = arith.constant 0 : index
    %c0_4 = arith.constant 0 : index
    %3 = vector.load %arg3[%c0_3, %c0_4] : memref<4x1xf32, #tpu.memory_space<vmem>>, vector<4x1xf32>
    %4 = vector.broadcast %3 : vector<4x1xf32> to vector<4x128xf32>
    %5 = arith.addf %2, %4 : vector<4x128xf32>
    %cst_5 = arith.constant 1.821500e-01 : f32
    %6 = vector.broadcast %cst_5 : f32 to vector<4x128xf32>
    %7 = arith.mulf %5, %6 : vector<4x128xf32>
    %c0_6 = arith.constant 0 : index
    %c0_7 = arith.constant 0 : index
    %8 = vector.load %arg4[%c0_6, %c0_7] : memref<4x128xf32, #tpu.memory_space<vmem>>, vector<4x128xf32>
    tpu.vector_store %arg4[%c0_6, %c0_7], %7 {strides = array<i32>} : memref<4x128xf32, #tpu.memory_space<vmem>>, vector<4x128xf32>,
    return
  }
  func.func @transform_0(%arg0: i32) -> (i32, i32) {
    %c0_i32 = arith.constant 0 : i32
    %c0_i32_0 = arith.constant 0 : i32
    return %c0_i32, %arg0 : i32, i32
  }
  func.func @transform_1(%arg0: i32) -> (i32, i32) {
    %c0_i32 = arith.constant 0 : i32
    %c0_i32_0 = arith.constant 0 : i32
    %c0_i32_1 = arith.constant 0 : i32
    return %c0_i32, %c0_i32_0 : i32, i32
  }
  func.func @transform_2(%arg0: i32) -> (i32, i32) {
    %c0_i32 = arith.constant 0 : i32
    %c0_i32_0 = arith.constant 0 : i32
    %c0_i32_1 = arith.constant 0 : i32
    return %c0_i32, %c0_i32_0 : i32, i32
  }
  func.func @transform_3(%arg0: i32) -> (i32, i32) {
    %c0_i32 = arith.constant 0 : i32
    %c0_i32_0 = arith.constant 0 : i32
    return %c0_i32, %arg0 : i32, i32
  }
}

</mosaic_0001>

<bundles_post_ra>
// kernel: tpu_custom_call.1
= control target key start
LH: loop header
LB: loop body
LE: loop exit
PB: predicated region body
PF: predicated region fallthrough
CT: control target
= control target key end

     0   :  { %8 = vsyncpa [#allocation3], 0  ;;  %s344_s0 = inlined_call_operand.hbm [shape: bf16[192,128], index: 0, kind: input, shape index: {}]   ;;  %s345_s1 = inlined_call_operand.vmem [shape: bf16[4,192], index: 1, kind: input, shape index: {}]   ;;  %s346_s2 = inlined_call_operand.vmem [shape: f32[4,1], index: 2, kind: input, shape index: {}]   ;;  %s347_s3 = inlined_call_operand.hbm [shape: f32[4,128], index: 3, kind: output, shape index: {}]  }
   0x1   :  { %9 = vsyncpa [#allocation4], 0  ;;  %s14_s14 = sshll.u32 %s344_s0, 4  ;;  %s307_s15 = smov [#allocation2]   ;;  %s15_s14 = int_to_ptr.hbm [resolvable:$true] %s14_s14 }
   0x2   :  { %s16_s16 = sshll.u32 %s307_s15, 4  ;;  %s308_s17 = smov 64   ;;  %s17_s16 = int_to_ptr.vmem [resolvable:$true] %s16_s16 }
   0x3   :  { %s309_s18 = smov 4  }
   0x4   :  { %22 = dma.hbm_to_vmem [thread:$0]  %s15_s14, 1536, %s17_s16, [#allocation3], %s308_s17, %s308_s17, %s309_s18  }
   0x5   :  { %303 = dma.done.wait [#allocation3], 1536  }
   0x6   :  { %304 = vsyncadd [#allocation3], 4294965760  ;;  %v244_v0 = vld [vmem:[#allocation2 + $0x38] sm:$0xff]  ;;  %v243_v2 = vld [vmem:[#allocation2 + $0x30] sm:$0xff]  ;;  %v310_v3 = vmov 0   ;;  %vm140_vm0 = vcmask 523264  }
   0x7   :  { %v248_v1 = vld [vmem:[#allocation2 + $0x58] sm:$0xff]  ;;  %143 = vmatpush.bf16.msra.mxu0 %v244_v0  ;;  %254 = vset.pattern.permute.xlu0 %v310_v3  ;;  %v247_v4 = vld [vmem:[#allocation2 + $0x50] sm:$0xff]  ;;  %v242_v7 = vld [vmem:[#allocation2 + $0x28] sm:$0xff]  ;;  %s178_s24 = sshll.u32 %s347_s3, 4  ;;  %s179_s24 = int_to_ptr.hbm [resolvable:$true] %s178_s24 }
   0x8   :  { %160 = vmatpush.bf16.msra.mxu1 %v248_v1  ;;  %v32_v5 = vld [vmem:[%s345_s1] sm:$0xf]  ;;  %v246_v8 = vld [vmem:[#allocation2 + $0x48] sm:$0xff]  ;;  %v241_v9 = vld [vmem:[#allocation2 + $0x20] sm:$0xff]  ;;  %s311_s1 = smov [#allocation5]  }
   0x9   :  { %64 = vst [vmem:[#allocation1] ss:$4 sm:$0xff] %v32_v5  ;;  %v57_v6 = vld [vmem:[%s346_s2] sm:$0xf]  ;;  %v245_v10 = vld [vmem:[#allocation2 + $0x40] sm:$0xff]  ;;  %v239_v13 = vld [vmem:[#allocation2 + $0x10] sm:$0xff] }
   0xa   :  { %60 = vperm.xlu0 %254, %v57_v6   ;;  %v240_v11 = vld [vmem:[#allocation2 + $0x18] sm:$0xff]  ;;  %v238_v14 = vld [vmem:[#allocation2 + $0x8] sm:$0xff]  ;;  %v237_v15 = vld [vmem:[#allocation2] sm:$0xff]  ;;  %s176_s2 = sshll.u32 %s311_s1, 4  ;;  %s177_s2 = int_to_ptr.vmem [resolvable:$true] %s176_s2 }
   0xb   :  { %144 = vmatpush.bf16.msra.mxu0 %v243_v2 }
   0xc   :  { %161 = vmatpush.bf16.msra.mxu1 %v247_v4 }
   0xf   :  { %145 = vmatpush.bf16.msra.mxu0 %v242_v7 }
  0x10   :  { %162 = vmatpush.bf16.msra.mxu1 %v246_v8  ;;  %v66_v12 = vld.sshfl [vmem:[#allocation1 + $0x8] sm:$0xff pattern:$0x73625140]  ;;  %v65_v16 = vld.sshfl [vmem:[#allocation1] sm:$0xff pattern:$0x73625140] }
  0x13   :  { %146 = vmatpush.bf16.msra.mxu0 %v241_v9 }
  0x14   :  { %163 = vmatpush.bf16.msra.mxu1 %v245_v10 }
  0x17   :  { %147 = vmatpush.bf16.msra.mxu0 %v240_v11  ;;  %236 = vmatmul.msk.bf16.vlgmr.msra.gmra.mxu1 %vm140_vm0, %v66_v12 }
  0x1b   :  { %148 = vmatpush.bf16.msra.mxu0 %v239_v13 }
  0x1f   :  { %149 = vmatpush.bf16.msra.mxu0 %v238_v14 }
  0x23   :  { %150 = vmatpush.bf16.msra.mxu0 %v237_v15 }
  0x26   :  { %151 = vmatmul.bf16.vlgmr.msra.gmra.mxu0 %v65_v16 }
  0x7c   :  { %v61_v19 = vpop.permute.xlu0 %60 }
  0x94   :  { %v165_v17 = vpop.f32.mrf.mxu1 }
  0x9c   :  { %v167_v18 = vpop.f32.mrf.mxu1 }
  0xa3   :  { %v152_v20 = vpop.f32.mrf.mxu0 }
  0xa4   :  { %v153_v21 = vadd.f32 %v152_v20, %v61_v19 }
  0xa6   :  { %v166_v22 = vadd.f32 %v165_v17, %v153_v21 }
  0xa8   :  { %v169_v23 = vmul.f32 0.18215, %v166_v22 }
  0xaa   :  { %170 = vst [vmem:[#allocation5] sm:$0xf] %v169_v23 }
  0xab   :  { %v154_v24 = vpop.f32.mrf.mxu0  ;;  %181 = dma.vmem_to_hbm [thread:$0]  %s177_s2, 64, %s179_s24, [#allocation4]  }
  0xac   :  { %305 = dma.done.wait [#allocation4], 64  }
  0xad   :  { %306 = vsyncadd [#allocation4], 4294967232 }
  0xae   :  { %186 = vsyncpa [#allocation3], 1 }
  0xaf   :  { %187 = vsyncpa [#allocation4], 1 }

</bundles_post_ra>
